<compile_context>
chip_gen: v5e
topology: v5e:2x2
jax: 0.10.0
libtpu: 0.0.40
codegen_flags: <defaults>
</compile_context>

<pallas_src>
import functools
import math

import jax
import jax.numpy as jnp
from jax.experimental import pallas as pl
from jax.experimental.pallas import tpu as pltpu


def _round_up(x, m):
    return ((x + m - 1) // m) * m


@functools.lru_cache(maxsize=None)
def _vmem_capacity_bytes():
    try:
        return int(pltpu.get_tpu_info().vmem_capacity_bytes)
    except Exception:
        return 64 << 20  # conservative (v7x per-core VMEM)


def _sublane_packing(dtype):
    # 8 rows/vreg for f32, 16 for bf16, 32 for int8/fp8.
    return max(8, 32 // jnp.dtype(dtype).itemsize)


def _pick_dim_tile(dim, align, max_tile):
    """Largest tile <= max_tile (multiple of `align`), preferring exact divisors of
    `dim` (no padding / no per-call jnp.pad); otherwise the least-padding candidate."""
    if dim <= max_tile:
        return _round_up(dim, align)
    best_t, best_pad = align, None
    t = max_tile
    while t >= align:
        pad = _round_up(dim, t) - dim
        if pad == 0:
            return t
        if best_pad is None or pad < best_pad:
            best_t, best_pad = t, pad
        t -= align
    return best_t


def _choose_tiles(M, K, N, compute_dtype):
    """Tile sizes (tm, tn, tk) for an (M, K) @ (K, N) matmul."""
    sublane = _sublane_packing(compute_dtype)
    decode = M <= 256                                   # weight-bandwidth-bound regime
    big_vmem = _vmem_capacity_bytes() >= (96 << 20)     # v5e/v6e have 128 MiB VMEM

    tm = _pick_dim_tile(M, sublane, 512)
    max_tn = 1024
    # Larger tk cuts accumulator RMW traffic (v5e: single vst slot) and, for decode,
    # streams the weight in fewer/larger DMAs.
    max_tk = 2048 if (decode or big_vmem) else 1024
    tn = _pick_dim_tile(N, 128, max_tn)
    tk = _pick_dim_tile(K, 128, max_tk)

    # Megacore (v7x: 2 TensorCores sharded over "parallel" axes): guarantee at least
    # 2 parallel blocks when the problem allows it.
    if _round_up(M, tm) // tm == 1 and _round_up(N, tn) // tn == 1 and tn >= 256:
        tn = _round_up((tn + 1) // 2, 128)
    return tm, tn, tk


# ---------------------------------------------------------------------------
# Kernels: 3-D grid (M//tm, N//tn, K//tk), K innermost, f32 VMEM accumulator,
# fused bias epilogue on the final K step.
# ---------------------------------------------------------------------------
def _rp_matmul_kernel(x_ref, w_ref, o_ref, acc_ref):
    @pl.when(pl.program_id(2) == 0)
    def _():
        acc_ref[...] = jnp.zeros_like(acc_ref)

    acc_ref[...] += jnp.dot(x_ref[...], w_ref[...],
                            preferred_element_type=jnp.float32)

    @pl.when(pl.program_id(2) == pl.num_programs(2) - 1)
    def _():
        o_ref[...] = acc_ref[...].astype(o_ref.dtype)


def _rp_matmul_bias_kernel(x_ref, w_ref, b_ref, o_ref, acc_ref):
    @pl.when(pl.program_id(2) == 0)
    def _():
        acc_ref[...] = jnp.zeros_like(acc_ref)

    acc_ref[...] += jnp.dot(x_ref[...], w_ref[...],
                            preferred_element_type=jnp.float32)

    @pl.when(pl.program_id(2) == pl.num_programs(2) - 1)
    def _():
        # b_ref is already f32 (prepared once in the wrapper).
        o_ref[...] = (acc_ref[...] + b_ref[...]).astype(o_ref.dtype)


def _tiled_matmul(x2d, w_t, b2d, out_dtype, tm, tn, tk, deep_weight_prefetch):
    """x2d: (Mp, Kp) compute dtype; w_t: (Kp, Np) compute dtype; b2d: (1, Np) f32|None."""
    Mp, Kp = x2d.shape
    Kp2, Np = w_t.shape
    assert Kp == Kp2
    grid = (Mp // tm, Np // tn, Kp // tk)

    in_itemsize = jnp.dtype(x2d.dtype).itemsize
    out_itemsize = jnp.dtype(out_dtype).itemsize

    x_spec = pl.BlockSpec((tm, tk), lambda i, j, k: (i, k))
    o_spec = pl.BlockSpec((tm, tn), lambda i, j, k: (i, j))
    w_index = lambda i, j, k: (k, j)
    w_buffers = 2
    if deep_weight_prefetch and grid[1] * grid[2] >= 3:
        # Decode-sized M: weight-BW bound; deepen weight prefetch to hide DMA latency.
        try:
            w_spec = pl.BlockSpec((tk, tn), w_index, pipeline_mode=pl.Buffered(3))
            w_buffers = 3
        except Exception:
            w_spec = pl.BlockSpec((tk, tn), w_index)
    else:
        w_spec = pl.BlockSpec((tk, tn), w_index)

    scratch = [pltpu.VMEM((tm, tn), jnp.float32)]

    vmem_bytes = (2 * tm * tk * in_itemsize
                  + w_buffers * tk * tn * in_itemsize
                  + 2 * tm * tn * out_itemsize
                  + tm * tn * 4
                  + (2 * tn * 4 if b2d is not None else 0))
    cap = _vmem_capacity_bytes()
    vmem_limit = min(max(int(vmem_bytes * 1.5) + (2 << 20), 32 << 20),
                     int(cap * 0.9))

    cost = pl.CostEstimate(
        flops=2 * Mp * Np * Kp,
        transcendentals=0,
        bytes_accessed=(grid[1] * Mp * Kp * in_itemsize     # x re-streamed per N tile
                        + grid[0] * Kp * Np * in_itemsize   # w re-streamed per M tile
                        + Mp * Np * out_itemsize),
    )
    cparams = pltpu.CompilerParams(
        dimension_semantics=("parallel", "parallel", "arbitrary"),
        vmem_limit_bytes=vmem_limit,
    )
    out_shape = jax.ShapeDtypeStruct((Mp, Np), out_dtype)

    if b2d is None:
        return pl.pallas_call(
            _rp_matmul_kernel,
            out_shape=out_shape,
            grid_spec=pltpu.PrefetchScalarGridSpec(
                num_scalar_prefetch=0,
                grid=grid,
                in_specs=[x_spec, w_spec],
                out_specs=o_spec,
                scratch_shapes=scratch,
            ),
            compiler_params=cparams,
            cost_estimate=cost,
        )(x2d, w_t)

    b_spec = pl.BlockSpec((1, tn), lambda i, j, k: (0, j))
    return pl.pallas_call(
        _rp_matmul_bias_kernel,
        out_shape=out_shape,
        grid_spec=pltpu.PrefetchScalarGridSpec(
            num_scalar_prefetch=0,
            grid=grid,
            in_specs=[x_spec, w_spec, b_spec],
            out_specs=o_spec,
            scratch_shapes=scratch,
        ),
        compiler_params=cparams,
        cost_estimate=cost,
    )(x2d, w_t, b2d)


# ---------------------------------------------------------------------------
# Wrapper-side weight / bias preparation (hoisted out of the forward pass).
# ---------------------------------------------------------------------------
def _prepare_weight(weight, tk, tn, compute_dtype):
    """PyTorch-layout weight (N, K) -> (Kp, Np) compute-dtype, contraction dim first."""
    w_t = weight.T.astype(compute_dtype)
    K, N = w_t.shape
    Kp, Np = _round_up(K, tk), _round_up(N, tn)
    if (Kp, Np) != (K, N):
        w_t = jnp.pad(w_t, ((0, Kp - K), (0, Np - N)))
    return w_t


def _prepare_bias(bias, tn):
    N = bias.shape[0]
    Np = _round_up(N, tn)
    b2d = bias.astype(jnp.float32).reshape(1, N)
    if Np != N:
        b2d = jnp.pad(b2d, ((0, 0), (0, Np - N)))
    return b2d


def row_parallel_linear(x, weight, bias=None, compute_dtype=jnp.bfloat16):
    """One-shot functional form of RowParallelLayer.forward (one TP rank's shard).

    NOTE: pays the weight relayout (transpose/cast/pad) on every call; for repeated
    use prefer RowParallelLayerPallas, which hoists and caches it.
    """
    if compute_dtype is None:
        compute_dtype = x.dtype
    in_features = x.shape[-1]
    col_size = weight.shape[0]
    assert weight.shape[1] == in_features

    lead_shape = x.shape[:-1]
    M = math.prod(lead_shape) if lead_shape else 1
    K, N = in_features, col_size
    out_dtype = x.dtype

    tm, tn, tk = _choose_tiles(M, K, N, compute_dtype)
    w_t = _prepare_weight(weight, tk, tn, compute_dtype)
    b2d = _prepare_bias(bias, tn) if bias is not None else None

    x2d = x.reshape(M, K).astype(compute_dtype)
    Mp, Kp = _round_up(M, tm), _round_up(K, tk)
    if (Mp, Kp) != (M, K):
        x2d = jnp.pad(x2d, ((0, Mp - M), (0, Kp - K)))

    out2d = _tiled_matmul(x2d, w_t, b2d, out_dtype, tm, tn, tk,
                          deep_weight_prefetch=(M <= 256))
    return out2d[:M, :N].reshape(*lead_shape, N)


class RowParallelLayerPallas:
    """Mirror of the PyTorch RowParallelLayer (one TP rank's local shard).

    The weight is stored pre-transposed to (K, N) in the MXU compute dtype at
    construction, and padded-to-tile variants are cached per tile configuration,
    so a forward pass is a single pallas_call with no per-call relayout.
    """
    # TODO(synk): optional v7x fp8 weight path (offline-quantized, per-tile scales).

    def __init__(self, row_size, col_size, world_size, rank, bias=False, key=None,
                 dtype=jnp.float32, compute_dtype=jnp.bfloat16):
        assert row_size % world_size == 0
        self.world_size = world_size
        self.rank = rank
        self.row_size = row_size
        self.col_size = col_size
        self.in_features = row_size // world_size
        self.compute_dtype = compute_dtype if compute_dtype is not None else dtype

        if key is None:
            key = jax.random.PRNGKey(0)
        wkey, bkey = jax.random.split(key)
        # Deterministic init matching nn.Linear's kaiming-uniform bound.
        bound = 1.0 / (self.in_features ** 0.5)
        self.weight = jax.random.uniform(
            wkey, (col_size, self.in_features), dtype=dtype, minval=-bound, maxval=bound)
        self.bias = (
            jax.random.uniform(bkey, (col_size,), dtype=dtype, minval=-bound, maxval=bound)
            if bias else None)

        # Hoisted relayout: contraction dim first, compute dtype.  Paid once here.
        self._w_t = self.weight.T.astype(self.compute_dtype)
        self._w_cache = {}   # (tk, tn) -> (Kp, Np) padded weight
        self._b_cache = {}   # tn -> (1, Np) f32 padded bias

    def _weight_for_tiles(self, tk, tn):
        cache_key = (tk, tn)
        w = self._w_cache.get(cache_key)
        if w is None:
            K, N = self._w_t.shape
            Kp, Np = _round_up(K, tk), _round_up(N, tn)
            w = self._w_t
            if (Kp, Np) != (K, N):
                w = jnp.pad(w, ((0, Kp - K), (0, Np - N)))
            self._w_cache[cache_key] = w
        return w

    def _bias_for_tiles(self, tn):
        b = self._b_cache.get(tn)
        if b is None:
            b = _prepare_bias(self.bias, tn)
            self._b_cache[tn] = b
        return b

    def __call__(self, x):
        assert x.shape[-1] == self.in_features
        lead_shape = x.shape[:-1]
        M = math.prod(lead_shape) if lead_shape else 1
        K, N = self.in_features, self.col_size
        out_dtype = x.dtype

        tm, tn, tk = _choose_tiles(M, K, N, self.compute_dtype)
        w_t = self._weight_for_tiles(tk, tn)
        b2d = self._bias_for_tiles(tn) if self.bias is not None else None

        x2d = x.reshape(M, K).astype(self.compute_dtype)
        Mp, Kp = _round_up(M, tm), _round_up(K, tk)
        if (Mp, Kp) != (M, K):
            x2d = jnp.pad(x2d, ((0, Mp - M), (0, Kp - K)))

        out2d = _tiled_matmul(x2d, w_t, b2d, out_dtype, tm, tn, tk,
                              deep_weight_prefetch=(M <= 256))
        return out2d[:M, :N].reshape(*lead_shape, N)


if __name__ == "__main__":
    # Small shapes: row_size=32, world_size=2 -> local in_features=16; col_size=32.
    batch, seq = 2, 8
    row_size, col_size, world_size, rank = 32, 32, 2, 0
    in_features = row_size // world_size

    key = jax.random.PRNGKey(0)
    xkey, pkey, pkey2 = jax.random.split(key, 3)
    x = jax.random.normal(xkey, (batch, seq, in_features), dtype=jnp.float32)

    # Reference computed with the same bf16-rounded operands the MXU sees
    # (f32 accumulation in both cases).
    x_bf = x.astype(jnp.bfloat16).astype(jnp.float32)

    # --- bias=False path (matches the module's default) ---
    layer = RowParallelLayerPallas(row_size, col_size, world_size, rank,
                                   bias=False, key=pkey)
    out = jax.block_until_ready(layer(x))
    w_bf = layer.weight.astype(jnp.bfloat16).astype(jnp.float32)
    ref = jnp.einsum("bsk,nk->bsn", x_bf, w_bf)
    assert out.shape == (batch, seq, col_size)
    assert out.dtype == x.dtype
    assert jnp.allclose(out, ref, atol=2e-3, rtol=2e-3)

    # --- bias=True path (exercises the epilogue-fused bias kernel) ---
    layer_b = RowParallelLayerPallas(row_size, col_size, world_size, rank,
                                     bias=True, key=pkey2)
    out_b = jax.block_until_ready(layer_b(x))
    w_bf2 = layer_b.weight.astype(jnp.bfloat16).astype(jnp.float32)
    ref_b = jnp.einsum("bsk,nk->bsn", x_bf, w_bf2) + layer_b.bias
    assert out_b.shape == (batch, seq, col_size)
    assert jnp.allclose(out_b, ref_b, atol=2e-3, rtol=2e-3)

    print("KERNEL_OK")
</pallas_src>

<mosaic_0001>
module attributes {stable_mosaic.version = 11 : i64} {
  func.func @_rp_matmul_kernel(%arg0: i32, %arg1: i32, %arg2: i32, %arg3: memref<16x128xbf16, #tpu.memory_space<vmem>>, %arg4: memref<128x128xbf16, #tpu.memory_space<vmem>>, %arg5: memref<16x128xf32, #tpu.memory_space<vmem>>, %arg6: memref<16x128xf32, #tpu.memory_space<vmem>>) attributes {dimension_semantics = [#tpu.dimension_semantics<parallel>, #tpu.dimension_semantics<parallel>, #tpu.dimension_semantics<arbitrary>], iteration_bounds = array<i64: 1, 1, 1>, scalar_prefetch = 0 : i64, scratch_operands = 1 : i64, tpu.core_type = #tpu.core_type<tc>, window_params = [{transform_indices = @transform_0, window_bounds = array<i64: 16, 128>}, {transform_indices = @transform_1, window_bounds = array<i64: 128, 128>}, {transform_indices = @transform_2, window_bounds = array<i64: 16, 128>}]} {
    %c0_i32 = arith.constant 0 : i32
    %0 = arith.cmpi eq, %arg2, %c0_i32 : i32
    %1 = arith.extui %0 : i1 to i32
    %c0_i32_0 = arith.constant 0 : i32
    %2 = arith.cmpi ne, %1, %c0_i32_0 : i32
    scf.if %2 {
      %cst_10 = arith.constant 0.000000e+00 : f32
      %12 = vector.broadcast %cst_10 : f32 to vector<16x128xf32>
      %c0_11 = arith.constant 0 : index
      %c0_12 = arith.constant 0 : index
      %13 = vector.load %arg6[%c0_11, %c0_12] : memref<16x128xf32, #tpu.memory_space<vmem>>, vector<16x128xf32>
      tpu.vector_store %arg6[%c0_11, %c0_12], %12 {strides = array<i32>} : memref<16x128xf32, #tpu.memory_space<vmem>>, vector<16x128xf32>,
    } else {
    }
    %c0 = arith.constant 0 : index
    %c0_1 = arith.constant 0 : index
    %3 = vector.load %arg6[%c0, %c0_1] : memref<16x128xf32, #tpu.memory_space<vmem>>, vector<16x128xf32>
    %c0_2 = arith.constant 0 : index
    %c0_3 = arith.constant 0 : index
    %4 = vector.load %arg3[%c0_2, %c0_3] : memref<16x128xbf16, #tpu.memory_space<vmem>>, vector<16x128xbf16>
    %c0_4 = arith.constant 0 : index
    %c0_5 = arith.constant 0 : index
    %5 = vector.load %arg4[%c0_4, %c0_5] : memref<128x128xbf16, #tpu.memory_space<vmem>>, vector<128x128xbf16>
    %cst = arith.constant dense<0.000000e+00> : vector<16x128xf32>
    %6 = tpu.matmul %4, %5, %cst {dimension_numbers = #tpu.dot_dimension_numbers<[1], [0], [0], [1], [0, 0, 1, 1], [], []>} : vector<16x128xbf16>, vector<128x128xbf16>, vector<16x128xf32> -> vector<16x128xf32>
    %7 = arith.addf %3, %6 : vector<16x128xf32>
    %c0_6 = arith.constant 0 : index
    %c0_7 = arith.constant 0 : index
    %8 = vector.load %arg6[%c0_6, %c0_7] : memref<16x128xf32, #tpu.memory_space<vmem>>, vector<16x128xf32>
    tpu.vector_store %arg6[%c0_6, %c0_7], %7 {strides = array<i32>} : memref<16x128xf32, #tpu.memory_space<vmem>>, vector<16x128xf32>,
    %c0_i32_8 = arith.constant 0 : i32
    %9 = arith.cmpi eq, %arg2, %c0_i32_8 : i32
    %10 = arith.extui %9 : i1 to i32
    %c0_i32_9 = arith.constant 0 : i32
    %11 = arith.cmpi ne, %10, %c0_i32_9 : i32
    scf.if %11 {
      %c0_10 = arith.constant 0 : index
      %c0_11 = arith.constant 0 : index
      %12 = vector.load %arg6[%c0_10, %c0_11] : memref<16x128xf32, #tpu.memory_space<vmem>>, vector<16x128xf32>
      %c0_12 = arith.constant 0 : index
      %c0_13 = arith.constant 0 : index
      %13 = vector.load %arg5[%c0_12, %c0_13] : memref<16x128xf32, #tpu.memory_space<vmem>>, vector<16x128xf32>
      tpu.vector_store %arg5[%c0_12, %c0_13], %12 {strides = array<i32>} : memref<16x128xf32, #tpu.memory_space<vmem>>, vector<16x128xf32>,
    } else {
    }
    return
  }
  func.func @transform_0(%arg0: i32, %arg1: i32, %arg2: i32) -> (i32, i32) {
    %c0_i32 = arith.constant 0 : i32
    return %arg0, %arg2 : i32, i32
  }
  func.func @transform_1(%arg0: i32, %arg1: i32, %arg2: i32) -> (i32, i32) {
    %c0_i32 = arith.constant 0 : i32
    return %arg2, %arg1 : i32, i32
  }
  func.func @transform_2(%arg0: i32, %arg1: i32, %arg2: i32) -> (i32, i32) {
    %c0_i32 = arith.constant 0 : i32
    return %arg0, %arg1 : i32, i32
  }
}

</mosaic_0001>

<bundles_post_ra>
// kernel: tpu_custom_call.1
= control target key start
LH: loop header
LB: loop body
LE: loop exit
PB: predicated region body
PF: predicated region fallthrough
CT: control target
= control target key end

     0   :  { %7 = vsyncpa [#allocation4], 0  ;;  %s330_s0 = inlined_call_operand.hbm [shape: bf16[16,128], index: 0, kind: input, shape index: {}]   ;;  %s331_s1 = inlined_call_operand.hbm [shape: bf16[128,128], index: 1, kind: input, shape index: {}]   ;;  %s332_s2 = inlined_call_operand.hbm [shape: f32[16,128], index: 2, kind: output, shape index: {}]  }
   0x1   :  { %8 = vsyncpa [#allocation7], 0 }
   0x2   :  { %9 = vsyncpa [#allocation5], 0  ;;  %s14_s11 = sshll.u32 %s330_s0, 4  ;;  %s299_s12 = smov [#allocation3]   ;;  %s15_s11 = int_to_ptr.hbm [resolvable:$true] %s14_s11 }
   0x3   :  { %s16_s13 = sshll.u32 %s299_s12, 4  ;;  %s27_s16 = sshll.u32 %s331_s1, 4  ;;  %s17_s13 = int_to_ptr.vmem [resolvable:$true] %s16_s13  ;;  %s28_s16 = int_to_ptr.hbm [resolvable:$true] %s27_s16 }
   0x4   :  { %s300_s17 = smov 64   ;;  %s301_s18 = smov 4  }
   0x5   :  { %22 = dma.hbm_to_vmem [thread:$0]  %s15_s11, 128, %s17_s13, [#allocation4], %s300_s17, %s300_s17, %s301_s18  }
   0x6   :  { %s302_s19 = smov [#allocation6]  }
   0x7   :  { %s29_s20 = sshll.u32 %s302_s19, 4  ;;  %s30_s20 = int_to_ptr.vmem [resolvable:$true] %s29_s20 }
   0x8   :  { %35 = dma.hbm_to_vmem [thread:$0]  %s28_s16, 1024, %s30_s20, [#allocation7], %s300_s17, %s300_s17, %s301_s18  }
   0x9   :  { %293 = dma.done.wait [#allocation4], 128  }
   0xa   :  { %294 = vsyncadd [#allocation4], 4294967168 }
   0xb   :  { %295 = dma.done.wait [#allocation7], 1024  }
   0xc   :  { %296 = vsyncadd [#allocation7], 4294966272  ;;  %v213_v0 = vld [vmem:[#allocation6 + $0x38] sm:$0xff]  ;;  %v212_v1 = vld [vmem:[#allocation6 + $0x30] sm:$0xff]  ;;  %s303_s0 = smov [#allocation8]   ;;  %s155_s23 = sshll.u32 %s332_s2, 4  ;;  %s156_s23 = int_to_ptr.hbm [resolvable:$true] %s155_s23 }
   0xd   :  { %124 = vmatpush.bf16.msra.mxu0 %v213_v0  ;;  %v211_v2 = vld [vmem:[#allocation6 + $0x28] sm:$0xff]  ;;  %v210_v3 = vld [vmem:[#allocation6 + $0x20] sm:$0xff]  ;;  %v209_v4 = vld [vmem:[#allocation6 + $0x18] sm:$0xff]  ;;  %s153_s1 = sshll.u32 %s303_s0, 4  ;;  %s304_s24 = smov 128   ;;  %s154_s1 = int_to_ptr.vmem [resolvable:$true] %s153_s1 }
   0xe   :  { %v208_v5 = vld [vmem:[#allocation6 + $0x10] sm:$0xff]  ;;  %v207_v6 = vld [vmem:[#allocation6 + $0x8] sm:$0xff]  ;;  %v206_v7 = vld [vmem:[#allocation6] sm:$0xff]  ;;  %s305_s25 = smov 8  }
   0xf   :  { %v205_v8 = vld [vmem:[#allocation3] sm:$0xff] }
  0x11   :  { %125 = vmatpush.bf16.msra.mxu0 %v212_v1 }
  0x15   :  { %126 = vmatpush.bf16.msra.mxu0 %v211_v2 }
  0x19   :  { %127 = vmatpush.bf16.msra.mxu0 %v210_v3 }
  0x1d   :  { %128 = vmatpush.bf16.msra.mxu0 %v209_v4 }
  0x21   :  { %129 = vmatpush.bf16.msra.mxu0 %v208_v5 }
  0x25   :  { %130 = vmatpush.bf16.msra.mxu0 %v207_v6 }
  0x29   :  { %131 = vmatpush.bf16.msra.mxu0 %v206_v7 }
  0x2c   :  { %132 = vmatmul.bf16.vlgmr.msra.gmra.mxu0 %v205_v8 }
  0xa9   :  { %v133_v9 = vpop.f32.mrf.mxu0 }
  0xaa   :  { %147 = vst [vmem:[#allocation8] sm:$0xff] %v133_v9 }
  0xb1   :  { %v135_v10 = vpop.f32.mrf.mxu0 }
  0xb2   :  { %148 = vst [vmem:[#allocation8 + $0x8] sm:$0xff] %v135_v10 }
  0xb3   :  { %161 = dma.vmem_to_hbm [thread:$0]  %s154_s1, 256, %s156_s23, [#allocation5], %s304_s24, %s304_s24, %s305_s25  }
  0xb4   :  { %297 = dma.done.wait [#allocation5], 256  }
  0xb5   :  { %298 = vsyncadd [#allocation5], 4294967040 }
  0xb6   :  { %166 = vsyncpa [#allocation4], 1 }
  0xb7   :  { %167 = vsyncpa [#allocation7], 1 }
  0xb8   :  { %168 = vsyncpa [#allocation5], 1 }

</bundles_post_ra>
